<compile_context>
chip_gen: v7x
topology: tpu7x:2x2x1
jax: 0.10.0
libtpu: 0.0.40
codegen_flags: <defaults>
</compile_context>

<pallas_src>
import math
import functools

import jax
import jax.numpy as jnp
from jax.experimental import pallas as pl
from jax.experimental.pallas import tpu as pltpu


# ---------------------------------------------------------------------------
# Fused time-embedding kernel:  cond = Linear2(SiLU(Linear1(sincos(t))))
# ---------------------------------------------------------------------------

def _fused_time_mlp_kernel(t_ref, w1_ref, b1_ref, w2_ref, b2_ref, out_ref,
                           *, embed_dim, e_pad):
    half = embed_dim // 2

    # --- sinusoidal embedding, computed in-kernel (transcendentals -> EUP) ---
    lane = jax.lax.broadcasted_iota(jnp.int32, (1, e_pad), 1)          # (1, E_pad)
    k = jnp.where(lane < half, lane, lane - half).astype(jnp.float32)  # freq index
    freqs = jnp.exp((-math.log(10000.0) / half) * k)                   # (1, E_pad)
    args = t_ref[...] * freqs                                          # (B_pad, E_pad)
    emb = jnp.where(lane < half, jnp.sin(args), jnp.cos(args))         # [sin | cos]
    # zero the padded lanes E..E_pad (w1 pad rows are zero too; cheap insurance)
    emb = jnp.where(lane < embed_dim, emb, 0.0)

    # --- Linear -> SiLU -> Linear (MXU, fp32 accumulate) ---
    h = jnp.dot(emb, w1_ref[...], preferred_element_type=jnp.float32) + b1_ref[...]
    h = h * jax.nn.sigmoid(h)                                          # SiLU
    o = jnp.dot(h, w2_ref[...], preferred_element_type=jnp.float32) + b2_ref[...]
    out_ref[...] = o.astype(out_ref.dtype)


def time_embed_cond(t, params, *, embed_dim):
    """t: [B] -> cond: [B, cond_dim], single fused pallas_call."""
    assert embed_dim % 2 == 0, "sinusoidal embedder requires even embed_dim"
    w1, b1, w2, b2 = params["w1"], params["b1"], params["w2"], params["b2"]
    e_pad, hidden = w1.shape
    cond_dim = w2.shape[1]

    B = t.shape[0]
    b_pad = max(8, -(-B // 8) * 8)                       # sublane multiple
    t_pad = jnp.zeros((b_pad, 1), jnp.float32).at[:B, 0].set(t.astype(jnp.float32))

    kernel = functools.partial(_fused_time_mlp_kernel,
                               embed_dim=embed_dim, e_pad=e_pad)
    vmem = pl.BlockSpec(memory_space=pltpu.MemorySpace.VMEM)
    out = pl.pallas_call(
        kernel,
        out_shape=jax.ShapeDtypeStruct((b_pad, cond_dim), jnp.float32),
        in_specs=[vmem, vmem, vmem, vmem, vmem],
        out_specs=vmem,
    )(t_pad, w1, b1, w2, b2)
    return out[:B]


# ---------------------------------------------------------------------------
# Params (trunc_normal std=0.02 weights, zero biases; w1 zero-padded to 128 rows)
# ---------------------------------------------------------------------------

def make_params(key, embed_dim, cond_dim):
    hidden = cond_dim * 4
    e_pad = max(128, -(-embed_dim // 128) * 128)         # pad contraction dim once
    k1, k2 = jax.random.split(key)
    w1 = 0.02 * jax.random.truncated_normal(
        k1, -2.0, 2.0, (embed_dim, hidden), jnp.float32)
    w1 = jnp.zeros((e_pad, hidden), jnp.float32).at[:embed_dim].set(w1)
    b1 = jnp.zeros((1, hidden), jnp.float32)
    w2 = 0.02 * jax.random.truncated_normal(
        k2, -2.0, 2.0, (hidden, cond_dim), jnp.float32)
    b2 = jnp.zeros((1, cond_dim), jnp.float32)
    return dict(w1=w1, b1=b1, w2=w2, b2=b2)


# ---------------------------------------------------------------------------
# Forward (mirrors TemplateBackbone.forward, eval mode, empty stage list)
# ---------------------------------------------------------------------------

def template_backbone_forward(params, x_nchw, t=None, *, embed_dim=32,
                              enable_condition=True):
    cond = None
    if t is not None and enable_condition:
        cond = time_embed_cond(t, params, embed_dim=embed_dim)

    # Spatial path of the reference forward:
    #   rearrange(b c h w -> b h w c) -> pos_drop (eval: identity)
    #   -> [no stages defined in the template] -> rearrange(b h w c -> b c h w)
    # which is an exact identity, so it is elided (no transposes, no copy kernel).
    # TODO(synk): add real stage kernels (and training-mode dropout) here; fuse the
    # layout permutation into the first stage's BlockSpec index_map, lane-dense.
    return x_nchw, cond


# ---------------------------------------------------------------------------
# Pure-JAX reference for the cond path (numerical check)
# ---------------------------------------------------------------------------

def _reference_cond(t, params, embed_dim):
    half = embed_dim // 2
    freqs = jnp.exp(-math.log(10000.0) * jnp.arange(half, dtype=jnp.float32) / half)
    args = t.astype(jnp.float32)[:, None] * freqs[None, :]
    emb = jnp.concatenate([jnp.sin(args), jnp.cos(args)], axis=-1)
    h = emb @ params["w1"][:embed_dim] + params["b1"]
    h = h * jax.nn.sigmoid(h)
    return h @ params["w2"] + params["b2"]


# ---------------------------------------------------------------------------
# Demo
# ---------------------------------------------------------------------------

if __name__ == "__main__":
    key = jax.random.PRNGKey(0)
    k_x, k_t, k_p = jax.random.split(key, 3)

    B, C, H, W = 2, 4, 16, 16
    embed_dim = 32
    cond_dim = embed_dim * 4          # args['cond_dim'] falsy -> embed_dim * 4

    x = jax.random.normal(k_x, (B, C, H, W), jnp.float32)
    t = jax.random.uniform(k_t, (B,), jnp.float32, 0.0, 1000.0)
    params = make_params(k_p, embed_dim, cond_dim)

    y, cond = template_backbone_forward(params, x, t, embed_dim=embed_dim)
    jax.block_until_ready((y, cond))

    assert y.shape == (B, C, H, W)
    assert cond.shape == (B, cond_dim)
    # spatial path (empty stages, eval-mode dropout) is identity
    assert bool(jnp.allclose(y, x))
    # fused kernel matches the unfused JAX reference
    ref = _reference_cond(t, params, embed_dim)
    assert bool(jnp.allclose(cond, ref, rtol=1e-2, atol=1e-2))

    print("KERNEL_OK")
</pallas_src>

<mosaic_0001>
module attributes {stable_mosaic.version = 11 : i64} {
  func.func @_fused_time_mlp_kernel(%arg0: memref<8x1xf32, #tpu.memory_space<vmem>>, %arg1: memref<128x512xf32, #tpu.memory_space<vmem>>, %arg2: memref<1x512xf32, #tpu.memory_space<vmem>>, %arg3: memref<512x128xf32, #tpu.memory_space<vmem>>, %arg4: memref<1x128xf32, #tpu.memory_space<vmem>>, %arg5: memref<8x128xf32, #tpu.memory_space<vmem>>) attributes {dimension_semantics = [], scalar_prefetch = 0 : i64, scratch_operands = 0 : i64, tpu.core_type = #tpu.core_type<tc>} {
    %0 = tpu.iota {dimensions = array<i32: 1>} : vector<1x128xi32>
    %c16_i32 = arith.constant 16 : i32
    %1 = vector.broadcast %c16_i32 : i32 to vector<1x128xi32>
    %2 = arith.cmpi slt, %0, %1 : vector<1x128xi32>
    %c16_i32_0 = arith.constant 16 : i32
    %3 = vector.broadcast %c16_i32_0 : i32 to vector<1x128xi32>
    %4 = arith.subi %0, %3 : vector<1x128xi32>
    %5 = arith.select %2, %0, %4 : vector<1x128xi1>, vector<1x128xi32>
    %6 = arith.sitofp %5 : vector<1x128xi32> to vector<1x128xf32>
    %cst = arith.constant -0.575646281 : f32
    %7 = vector.broadcast %cst : f32 to vector<1x128xf32>
    %8 = arith.mulf %7, %6 : vector<1x128xf32>
    %9 = math.exp %8 : vector<1x128xf32>
    %c0 = arith.constant 0 : index
    %c0_1 = arith.constant 0 : index
    %10 = vector.load %arg0[%c0, %c0_1] : memref<8x1xf32, #tpu.memory_space<vmem>>, vector<8x1xf32>
    %11 = vector.broadcast %10 : vector<8x1xf32> to vector<8x128xf32>
    %12 = vector.broadcast %9 : vector<1x128xf32> to vector<8x128xf32>
    %13 = arith.mulf %11, %12 : vector<8x128xf32>
    %c16_i32_2 = arith.constant 16 : i32
    %14 = vector.broadcast %c16_i32_2 : i32 to vector<1x128xi32>
    %15 = arith.cmpi slt, %0, %14 : vector<1x128xi32>
    %16 = math.sin %13 : vector<8x128xf32>
    %17 = math.cos %13 : vector<8x128xf32>
    %18 = vector.shape_cast %15 : vector<1x128xi1> to vector<1x128xi1>
    %19 = vector.broadcast %18 : vector<1x128xi1> to vector<8x128xi1>
    %20 = arith.select %19, %16, %17 : vector<8x128xi1>, vector<8x128xf32>
    %c32_i32 = arith.constant 32 : i32
    %21 = vector.broadcast %c32_i32 : i32 to vector<1x128xi32>
    %22 = arith.cmpi slt, %0, %21 : vector<1x128xi32>
    %cst_3 = arith.constant 0.000000e+00 : f32
    %23 = vector.shape_cast %22 : vector<1x128xi1> to vector<1x128xi1>
    %24 = vector.broadcast %23 : vector<1x128xi1> to vector<8x128xi1>
    %25 = vector.broadcast %cst_3 : f32 to vector<8x128xf32>
    %26 = arith.select %24, %20, %25 : vector<8x128xi1>, vector<8x128xf32>
    %c0_4 = arith.constant 0 : index
    %c0_5 = arith.constant 0 : index
    %27 = vector.load %arg1[%c0_4, %c0_5] : memref<128x512xf32, #tpu.memory_space<vmem>>, vector<128x512xf32>
    %cst_6 = arith.constant dense<0.000000e+00> : vector<8x512xf32>
    %28 = tpu.matmul %26, %27, %cst_6 {dimension_numbers = #tpu.dot_dimension_numbers<[1], [0], [0], [1], [0, 0, 1, 1], [], []>} : vector<8x128xf32>, vector<128x512xf32>, vector<8x512xf32> -> vector<8x512xf32>
    %c0_7 = arith.constant 0 : index
    %c0_8 = arith.constant 0 : index
    %29 = vector.load %arg2[%c0_7, %c0_8] : memref<1x512xf32, #tpu.memory_space<vmem>>, vector<1x512xf32>
    %30 = vector.broadcast %29 : vector<1x512xf32> to vector<8x512xf32>
    %31 = arith.addf %28, %30 : vector<8x512xf32>
    %32 = arith.negf %31 : vector<8x512xf32>
    %33 = math.exp %32 : vector<8x512xf32>
    %cst_9 = arith.constant 1.000000e+00 : f32
    %34 = vector.broadcast %cst_9 : f32 to vector<8x512xf32>
    %35 = arith.addf %34, %33 : vector<8x512xf32>
    %36 = arith.divf %34, %35 : vector<8x512xf32>
    %37 = arith.mulf %31, %36 : vector<8x512xf32>
    %c0_10 = arith.constant 0 : index
    %c0_11 = arith.constant 0 : index
    %38 = vector.load %arg3[%c0_10, %c0_11] : memref<512x128xf32, #tpu.memory_space<vmem>>, vector<512x128xf32>
    %cst_12 = arith.constant dense<0.000000e+00> : vector<8x128xf32>
    %39 = tpu.matmul %37, %38, %cst_12 {dimension_numbers = #tpu.dot_dimension_numbers<[1], [0], [0], [1], [0, 0, 1, 1], [], []>} : vector<8x512xf32>, vector<512x128xf32>, vector<8x128xf32> -> vector<8x128xf32>
    %c0_13 = arith.constant 0 : index
    %c0_14 = arith.constant 0 : index
    %40 = vector.load %arg4[%c0_13, %c0_14] : memref<1x128xf32, #tpu.memory_space<vmem>>, vector<1x128xf32>
    %41 = vector.broadcast %40 : vector<1x128xf32> to vector<8x128xf32>
    %42 = arith.addf %39, %41 : vector<8x128xf32>
    %c0_15 = arith.constant 0 : index
    %c0_16 = arith.constant 0 : index
    %43 = vector.load %arg5[%c0_15, %c0_16] : memref<8x128xf32, #tpu.memory_space<vmem>>, vector<8x128xf32>
    tpu.vector_store %arg5[%c0_15, %c0_16], %42 {strides = array<i32>} : memref<8x128xf32, #tpu.memory_space<vmem>>, vector<8x128xf32>,
    return
  }
}

</mosaic_0001>

<bundles_post_ra>
// kernel: tpu_custom_call.1
= control target key start
LH: loop header
LB: loop body
LE: loop exit
PB: predicated region body
PF: predicated region fallthrough
CT: control target
= control target key end

     0   :  { %10 = vsyncpa [#allocation3], 0  ;;  %s1214_s0 = inlined_call_operand.vmem [shape: f32[8,1], index: 0, kind: input, shape index: {}]   ;;  %s1215_s1 = inlined_call_operand.hbm [shape: f32[128,512], index: 1, kind: input, shape index: {}]   ;;  %s1216_s2 = inlined_call_operand.vmem [shape: f32[1,512], index: 2, kind: input, shape index: {}]   ;;  %s1217_s3 = inlined_call_operand.hbm [shape: f32[512,128], index: 3, kind: input, shape index: {}]   ;;  %s1218_s4 = inlined_call_operand.vmem [shape: f32[1,128], index: 4, kind: input, shape index: {}]   ;;  %s1219_s5 = inlined_call_operand.hbm [shape: f32[8,128], index: 5, kind: output, shape index: {}]  }
   0x1   :  { %11 = vsyncpa [#allocation6], 0 }
   0x2   :  { %12 = vsyncpa [#allocation4], 0  ;;  %s1091_s18 = smov [#allocation2]   ;;  %s1019_s22 = scalar_lea.hbm %s1215_s1, 8192 }
   0x3   :  { %s20_s19 = sshll.u32 %s1091_s18, 4  ;;  %p1020_p0 = scmp.ne.s32.totalorder %s1215_s1, %s1019_s22  ;;  %s21_s19 = int_to_ptr.vmem [resolvable:$true] %s20_s19 }
   0x4   :  { %p1023_p1 = scmp.lt.u32.totalorder %s1019_s22, %s1215_s1 }
   0x6   :  { %p1025_p2 = pnand %p1023_p1, %p1020_p0 }
   0x8   :  { %1028 = shalt.err (!%p1025_p2)
}
   0x9   :  { %s1029_s27 = scalar_lea.vmem %s21_s19, 8192  ;;  %p1034_p4 = scmp.lt.s32.totalorder %s21_s19, %s21_s19 }
   0xa   :  { %p1030_p3 = scmp.ne.s32.totalorder %s21_s19, %s1029_s27  ;;  %p1035_p5 = scmp.lt.s32.totalorder %s1029_s27, %s1029_s27 }
   0xc   :  { %p1036_p6 = por %p1035_p5, %p1034_p4 }
   0xe   :  { %p1037_p7 = pnand %p1036_p6, %p1030_p3 }
  0x10   :  { %1040 = shalt.err (!%p1037_p7)
}
  0x11   :  { %s1092_s28 = smov 512   ;;  %s1093_s29 = smov 32  }
  0x12   :  { %26 = dma.hbm_to_vmem [thread:$0]  %s1215_s1, 8192, %s21_s19, [#allocation3], %s1092_s28, %s1092_s28, %s1093_s29  }
  0x13   :  { %s1094_s7 = smov [#allocation5]   ;;  %s1041_s11 = scalar_lea.hbm %s1217_s3, 8192 }
  0x14   :  { %s34_s8 = sshll.u32 %s1094_s7, 4  ;;  %p1042_p8 = scmp.ne.s32.totalorder %s1217_s3, %s1041_s11  ;;  %s35_s8 = int_to_ptr.vmem [resolvable:$true] %s34_s8 }
  0x15   :  { %p1045_p9 = scmp.lt.u32.totalorder %s1041_s11, %s1217_s3 }
  0x17   :  { %p1047_p10 = pnand %p1045_p9, %p1042_p8 }
  0x19   :  { %1050 = shalt.err (!%p1047_p10)
}
  0x1a   :  { %s1051_s16 = scalar_lea.vmem %s35_s8, 8192  ;;  %p1056_p12 = scmp.lt.s32.totalorder %s35_s8, %s35_s8 }
  0x1b   :  { %p1052_p11 = scmp.ne.s32.totalorder %s35_s8, %s1051_s16  ;;  %p1057_p13 = scmp.lt.s32.totalorder %s1051_s16, %s1051_s16 }
  0x1d   :  { %p1058_p0 = por %p1057_p13, %p1056_p12 }
  0x1f   :  { %p1059_p1 = pnand %p1058_p0, %p1052_p11 }
  0x21   :  { %1062 = shalt.err (!%p1059_p1)
}
  0x22   :  { %s1095_s1 = smov 128   ;;  %s1096_s17 = smov 8  }
  0x23   :  { %40 = dma.hbm_to_vmem [thread:$0]  %s1217_s3, 8192, %s35_s8, [#allocation6], %s1095_s1, %s1095_s1, %s1096_s17  }
  0x24   :  { %1085 = dma.done.wait [#allocation3], 8192  }
  0x25   :  { %1086 = vsyncadd [#allocation3], 4294959104 }
  0x26   :  { %1087 = dma.done.wait [#allocation6], 8192  }
  0x27   :  { %1088 = vsyncadd [#allocation6], 4294959104  ;;  %v1097_v0 = vmov 0   ;;  %v58_v1 = vld [vmem:[%s1214_s0] sm:$0xff]  ;;  %v280_v2 = vld [vmem:[#allocation2 + $0x8] sm:$0xff]  ;;  %v1098_v62 = vmov 0.0  }
  0x28   :  { %996 = vset.pattern.permute.xlu0 %v1097_v0  ;;  %v284_v3 = vld [vmem:[#allocation2 + $0x28] sm:$0xff]  ;;  %v282_v4 = vld [vmem:[#allocation2 + $0x18] sm:$0xff]  ;;  %v279_v7 = vld [vmem:[#allocation2] sm:$0xff]  ;;  %429 = vmatprep.mubr.f32.mxu0 %v1098_v62  ;;  %s1105_s23 = smov [#allocation7]  }
  0x29   :  { %61 = vperm.xlu0 %996, %v58_v1   ;;  %v849_v5 = vpack.c.bf16 %v284_v3, %v280_v2  ;;  %v286_v6 = vld [vmem:[#allocation2 + $0x38] sm:$0xff]  ;;  %v283_v8 = vld [vmem:[#allocation2 + $0x20] sm:$0xff]  ;;  %v281_v11 = vld [vmem:[#allocation2 + $0x10] sm:$0xff]  ;;  %500 = vmatprep.mubr.f32.mxu1 %v1098_v62  ;;  %s753_s24 = sshll.u32 %s1105_s23, 4  ;;  %s754_s24 = int_to_ptr.vmem [resolvable:$true] %s753_s24 }
  0x2a   :  { %v881_v9 = vpack.c.bf16 %v286_v6, %v282_v4  ;;  %v851_v10 = vpack.c.bf16 %v283_v8, %v279_v7  ;;  %v285_v12 = vld [vmem:[#allocation2 + $0x30] sm:$0xff]  ;;  %v288_v14 = vld [vmem:[#allocation2 + $0x48] sm:$0xff]  ;;  %v290_v16 = vld [vmem:[#allocation2 + $0x58] sm:$0xff]  ;;  %s1063_s25 = scalar_lea.vmem %s754_s24, 128  ;;  %p1068_p3 = scmp.lt.s32.totalorder %s754_s24, %s754_s24 }
  0x2b   :  { %850 = vmatprep.subr.bf16.mxu0 %v849_v5  ;;  %v883_v13 = vpack.c.bf16 %v285_v12, %v281_v11  ;;  %v292_v15 = vld [vmem:[#allocation2 + $0x68] sm:$0xff]  ;;  %v294_v18 = vld [vmem:[#allocation2 + $0x78] sm:$0xff]  ;;  %v287_v19 = vld [vmem:[#allocation2 + $0x40] sm:$0xff]  ;;  %p1064_p2 = scmp.ne.s32.totalorder %s754_s24, %s1063_s25  ;;  %p1069_p4 = scmp.lt.s32.totalorder %s1063_s25, %s1063_s25 }
  0x2c   :  { %882 = vmatprep.subr.bf16.mxu1 %v881_v9  ;;  %852 = vmatpush1.bf16.msra.mxu0 %v851_v10  ;;  %v853_v17 = vpack.c.bf16 %v292_v15, %v288_v14  ;;  %v291_v20 = vld [vmem:[#allocation2 + $0x60] sm:$0xff]  ;;  %v885_v21 = vpack.c.bf16 %v294_v18, %v290_v16  ;;  %v289_v23 = vld [vmem:[#allocation2 + $0x50] sm:$0xff]  ;;  %v296_v26 = vld [vmem:[#allocation2 + $0x88] sm:$0xff] }
  0x2d   :  { %884 = vmatpush1.bf16.msra.mxu1 %v883_v13  ;;  %v855_v22 = vpack.c.bf16 %v291_v20, %v287_v19  ;;  %v293_v24 = vld [vmem:[#allocation2 + $0x70] sm:$0xff]  ;;  %v300_v27 = vld [vmem:[#allocation2 + $0xa8] sm:$0xff]  ;;  %v298_v28 = vld [vmem:[#allocation2 + $0x98] sm:$0xff]  ;;  %p1070_p5 = por %p1069_p4, %p1068_p3 }
  0x2e   :  { %854 = vmatprep.subr.bf16.mxu0 %v853_v17  ;;  %v887_v25 = vpack.c.bf16 %v293_v24, %v289_v23  ;;  %886 = vmatprep.subr.bf16.mxu1 %v885_v21  ;;  %v857_v29 = vpack.c.bf16 %v300_v27, %v296_v26  ;;  %v302_v30 = vld [vmem:[#allocation2 + $0xb8] sm:$0xff]  ;;  %v295_v31 = vld [vmem:[#allocation2 + $0x80] sm:$0xff]  ;;  %v297_v35 = vld [vmem:[#allocation2 + $0x90] sm:$0xff] }
  0x2f   :  { %v299_v32 = vld [vmem:[#allocation2 + $0xa0] sm:$0xff]  ;;  %v889_v33 = vpack.c.bf16 %v302_v30, %v298_v28  ;;  %v301_v36 = vld [vmem:[#allocation2 + $0xb0] sm:$0xff]  ;;  %v304_v38 = vld [vmem:[#allocation2 + $0xc8] sm:$0xff]  ;;  %p1071_p6 = pnand %p1070_p5, %p1064_p2 }
  0x30   :  { %856 = vmatpush1.bf16.msra.mxu0 %v855_v22  ;;  %v859_v34 = vpack.c.bf16 %v299_v32, %v295_v31  ;;  %v891_v37 = vpack.c.bf16 %v301_v36, %v297_v35  ;;  %v308_v39 = vld [vmem:[#allocation2 + $0xe8] sm:$0xff]  ;;  %v306_v40 = vld [vmem:[#allocation2 + $0xd8] sm:$0xff]  ;;  %v303_v43 = vld [vmem:[#allocation2 + $0xc0] sm:$0xff]  ;;  %v49_v35 = vlaneseq }
  0x31   :  { %888 = vmatpush1.bf16.msra.mxu1 %v887_v25  ;;  %858 = vmatprep.subr.bf16.mxu0 %v857_v29  ;;  %v861_v41 = vpack.c.bf16 %v308_v39, %v304_v38  ;;  %v310_v42 = vld [vmem:[#allocation2 + $0xf8] sm:$0xff]  ;;  %v307_v44 = vld [vmem:[#allocation2 + $0xe0] sm:$0xff]  ;;  %v305_v47 = vld [vmem:[#allocation2 + $0xd0] sm:$0xff] }
  0x32   :  { %890 = vmatprep.subr.bf16.mxu1 %v889_v33  ;;  %v893_v45 = vpack.c.bf16 %v310_v42, %v306_v40  ;;  %v863_v46 = vpack.c.bf16 %v307_v44, %v303_v43  ;;  %v309_v48 = vld [vmem:[#allocation2 + $0xf0] sm:$0xff]  ;;  %v312_v50 = vld [vmem:[#allocation2 + $0x108] sm:$0xff]  ;;  %v314_v52 = vld [vmem:[#allocation2 + $0x118] sm:$0xff]  ;;  %v1164_v36 = vand.u32 127, %v49_v35 }
  0x33   :  { %v895_v49 = vpack.c.bf16 %v309_v48, %v305_v47  ;;  %v316_v51 = vld [vmem:[#allocation2 + $0x128] sm:$0xff]  ;;  %v318_v54 = vld [vmem:[#allocation2 + $0x138] sm:$0xff]  ;;  %v311_v55 = vld [vmem:[#allocation2 + $0x100] sm:$0xff] }
  0x34   :  { %860 = vmatpush1.bf16.msra.mxu0 %v859_v34  ;;  %v865_v53 = vpack.c.bf16 %v316_v51, %v312_v50  ;;  %v315_v56 = vld [vmem:[#allocation2 + $0x120] sm:$0xff]  ;;  %v897_v57 = vpack.c.bf16 %v318_v54, %v314_v52  ;;  %v313_v59 = vld [vmem:[#allocation2 + $0x110] sm:$0xff]  ;;  %v320_v61 = vld [vmem:[#allocation2 + $0x148] sm:$0xff]  ;;  %vm51_vm0 = vcmp.lt.s32.totalorder %v1164_v36, 16 }
  0x35   :  { %892 = vmatpush1.bf16.msra.mxu1 %v891_v37  ;;  %862 = vmatprep.subr.bf16.mxu0 %v861_v41  ;;  %v867_v58 = vpack.c.bf16 %v315_v56, %v311_v55  ;;  %v317_v60 = vld [vmem:[#allocation2 + $0x130] sm:$0xff]  ;;  %v324_v0 = vld [vmem:[#allocation2 + $0x168] sm:$0xff]  ;;  %v322_v1 = vld [vmem:[#allocation2 + $0x158] sm:$0xff]  ;;  %v763_v37 = vadd.s32 4294967280, %v1164_v36  ;;  %v1099_v55 = vmov 683565275  }
  0x36   :  { %894 = vmatprep.subr.bf16.mxu1 %v893_v45  ;;  %v899_v63 = vpack.c.bf16 %v317_v60, %v313_v59  ;;  %v326_v2 = vld [vmem:[#allocation2 + $0x178] sm:$0xff]  ;;  %v869_v3 = vpack.c.bf16 %v324_v0, %v320_v61  ;;  %v319_v5 = vld [vmem:[#allocation2 + $0x140] sm:$0xff]  ;;  %v321_v7 = vld [vmem:[#allocation2 + $0x150] sm:$0xff]  ;;  %v1101_v60 = vmov 2131351028  }
  0x37   :  { %v901_v4 = vpack.c.bf16 %v326_v2, %v322_v1  ;;  %v323_v6 = vld [vmem:[#allocation2 + $0x160] sm:$0xff]  ;;  %v325_v9 = vld [vmem:[#allocation2 + $0x170] sm:$0xff]  ;;  %v328_v10 = vld [vmem:[#allocation2 + $0x188] sm:$0xff]  ;;  %v53_v38 = vsel %vm51_vm0, %v1164_v36, %v763_v37  ;;  %v1103_v2 = vmov 920167782  }
  0x38   :  { %864 = vmatpush1.bf16.msra.mxu0 %v863_v46  ;;  %v871_v8 = vpack.c.bf16 %v323_v6, %v319_v5  ;;  %v332_v11 = vld [vmem:[#allocation2 + $0x1a8] sm:$0xff]  ;;  %v903_v12 = vpack.c.bf16 %v325_v9, %v321_v7  ;;  %v330_v14 = vld [vmem:[#allocation2 + $0x198] sm:$0xff]  ;;  %v327_v16 = vld [vmem:[#allocation2 + $0x180] sm:$0xff]  ;;  %v54_v39 = vcvt.s32.f32 %v53_v38  ;;  %v1104_v5 = vmov 1326507024  }
  0x39   :  { %896 = vmatpush1.bf16.msra.mxu1 %v895_v49  ;;  %866 = vmatprep.subr.bf16.mxu0 %v865_v53  ;;  %v873_v13 = vpack.c.bf16 %v332_v11, %v328_v10  ;;  %v334_v15 = vld [vmem:[#allocation2 + $0x1b8] sm:$0xff]  ;;  %v331_v18 = vld [vmem:[#allocation2 + $0x1a0] sm:$0xff]  ;;  %v329_v19 = vld [vmem:[#allocation2 + $0x190] sm:$0xff] }
  0x3a   :  { %898 = vmatprep.subr.bf16.mxu1 %v897_v57  ;;  %v905_v17 = vpack.c.bf16 %v334_v15, %v330_v14  ;;  %v333_v20 = vld [vmem:[#allocation2 + $0x1b0] sm:$0xff]  ;;  %v875_v21 = vpack.c.bf16 %v331_v18, %v327_v16  ;;  %v336_v22 = vld [vmem:[#allocation2 + $0x1c8] sm:$0xff]  ;;  %v338_v24 = vld [vmem:[#allocation2 + $0x1d8] sm:$0xff]  ;;  %v55_v40 = vmul.f32 -0.5756463, %v54_v39 }
  0x3b   :  { %v340_v23 = vld [vmem:[#allocation2 + $0x1e8] sm:$0xff]  ;;  %v907_v25 = vpack.c.bf16 %v333_v20, %v329_v19  ;;  %v342_v27 = vld [vmem:[#allocation2 + $0x1f8] sm:$0xff]  ;;  %v335_v28 = vld [vmem:[#allocation2 + $0x1c0] sm:$0xff]  ;;  %v1100_v57 = vmov 2475754826  }
  0x3c   :  { %868 = vmatpush1.bf16.msra.mxu0 %v867_v58  ;;  %v877_v26 = vpack.c.bf16 %v340_v23, %v336_v22  ;;  %v339_v29 = vld [vmem:[#allocation2 + $0x1e0] sm:$0xff]  ;;  %v909_v30 = vpack.c.bf16 %v342_v27, %v338_v24  ;;  %v337_v31 = vld [vmem:[#allocation2 + $0x1d0] sm:$0xff]  ;;  %v56_v41 = vmul.f32 1.442695, %v55_v40 }
  0x3d   :  { %900 = vmatpush1.bf16.msra.mxu1 %v899_v63  ;;  %870 = vmatprep.subr.bf16.mxu0 %v869_v3  ;;  %v341_v32 = vld [vmem:[#allocation2 + $0x1f0] sm:$0xff]  ;;  %v879_v33 = vpack.c.bf16 %v339_v29, %v335_v28  ;;  %v1102_v63 = vmov 2102212464  }
  0x3e   :  { %902 = vmatprep.subr.bf16.mxu1 %v901_v4  ;;  %v911_v34 = vpack.c.bf16 %v341_v32, %v337_v31  ;;  %997 = vpow2.f32 %v56_v41 }
  0x40   :  { %872 = vmatpush1.bf16.msra.mxu0 %v871_v8 }
  0x41   :  { %904 = vmatpush1.bf16.msra.mxu1 %v903_v12  ;;  %874 = vmatprep.subr.bf16.mxu0 %v873_v13 }
  0x42   :  { %906 = vmatprep.subr.bf16.mxu1 %v905_v17 }
  0x44   :  { %876 = vmatpush1.bf16.msra.mxu0 %v875_v21 }
  0x45   :  { %908 = vmatpush1.bf16.msra.mxu1 %v907_v25  ;;  %878 = vmatprep.subr.bf16.mxu0 %v877_v26 }
  0x46   :  { %910 = vmatprep.subr.bf16.mxu1 %v909_v30 }
  0x48   :  { %880 = vmatpush1.bf16.msra.mxu0 %v879_v33  ;;  %v998_v42 = vpop.eup %997 }
  0x49   :  { %912 = vmatpush1.bf16.msra.mxu1 %v911_v34 }
  0xa8   :  { %v62_v43 = vpop.permute.xlu0 %61 }
  0xa9   :  { %v1171_v44 = vmul.f32 %v998_v42, %v62_v43 }
  0xab   :  { %v68_v45 = vand.u32 2139095040, %v1171_v44  ;;  %v65_v49 = vand.u32 2147483647, %v1171_v44  ;;  %vm67_vm8 = vcmp.lt.s32.totalorder %v1171_v44, 0 }
  0xad   :  { %v69_v46 = vshrl.u32 %v68_v45, 23  ;;  %v72_v52 = vand.u32 8388607, %v65_v49  ;;  %vm66_vm9 = vcmp.le.f32.partialorder %v65_v49, 0.7853982 }
  0xaf   :  { %v764_v47 = vadd.s32 4294967169, %v69_v46  ;;  %v73_v7 = vor.u32 8388608, %v72_v52 }
  0xb1   :  { %v75_v48 = vadd.s32 1, %v764_v47  ;;  %v113_v21 = vshll.u32 %v73_v7, 8 }
  0xb3   :  { %vm76_vm1 = vcmp.gt.s32.totalorder %v75_v48, 0 }
  0xb4   :  { %v77_v50 = vsel %vm76_vm1, %v75_v48, 0  ;;  %vm157_vm1 = vweird.f32 %v1171_v44 }
  0xb5   :  { %v79_v51 = vand.u32 31, %v77_v50  ;;  %v78_v54 = vshrl.u32 %v77_v50, 5 }
  0xb7   :  { %v80_v53 = vsub.s32 32, %v79_v51  ;;  %v82_v56 = vshll.u32 %v1099_v55, %v79_v51  ;;  %v85_v58 = vshll.u32 %v1100_v57, %v79_v51  ;;  %v88_v62 = vshll.u32 %v1101_v60, %v79_v51 }
  0xb8   :  { %v91_v1 = vshll.u32 %v1102_v63, %v79_v51  ;;  %v94_v4 = vshll.u32 %v1103_v2, %v79_v51  ;;  %vm97_vm2 = vcmp.lt.s32.totalorder %v78_v54, 1  ;;  %vm100_vm3 = vcmp.lt.s32.totalorder %v78_v54, 4 }
  0xb9   :  { %v83_v59 = vshrl.u32 %v1100_v57, %v80_v53  ;;  %v86_v61 = vshrl.u32 %v1101_v60, %v80_v53  ;;  %v89_v0 = vshrl.u32 %v1102_v63, %v80_v53  ;;  %v92_v3 = vshrl.u32 %v1103_v2, %v80_v53 }
  0xba   :  { %v95_v6 = vshrl.u32 %v1104_v5, %v80_v53  ;;  %v81_v16 = vshrl.u32 %v1099_v55, %v80_v53  ;;  %vm99_vm4 = vcmp.lt.s32.totalorder %v78_v54, 3  ;;  %vm98_vm5 = vcmp.lt.s32.totalorder %v78_v54, 2 }
  0xbb   :  { %v84_v8 = vor.u32 %v83_v59, %v82_v56  ;;  %v87_v9 = vor.u32 %v86_v61, %v85_v58  ;;  %v90_v10 = vor.u32 %v89_v0, %v88_v62  ;;  %v93_v11 = vor.u32 %v92_v3, %v91_v1 }
  0xbc   :  { %v96_v12 = vor.u32 %v95_v6, %v94_v4 }
  0xbd   :  { %v102_v13 = vsel %vm100_vm3, %v90_v10, 2102212464  ;;  %v105_v14 = vsel %vm97_vm2, %v84_v8, %v87_v9  ;;  %v109_v15 = vsel %vm97_vm2, %v87_v9, %v90_v10  ;;  %v106_v17 = vsel %vm100_vm3, %v93_v11, 920167782 }
  0xbe   :  { %v110_v18 = vsel %vm100_vm3, %v96_v12, 1326507024  ;;  %v107_v19 = vsel %vm99_vm4, %v90_v10, %v106_v17  ;;  %v101_v22 = vsel %vm97_vm2, %v81_v16, %v84_v8  ;;  %v103_v23 = vsel %vm99_vm4, %v87_v9, %v102_v13  ;;  %v551_v17 = vld [vmem:[#allocation5 + $0x80] sm:$0xff] }
  0xbf   :  { %v111_v20 = vsel %vm99_vm4, %v93_v11, %v110_v18  ;;  %v108_v24 = vsel %vm98_vm5, %v105_v14, %v107_v19  ;;  %v104_v30 = vsel %vm98_vm5, %v101_v22, %v103_v23  ;;  %vm275_vm2 = vcmp.lt.s32.totalorder %v1164_v36, 32  ;;  %v552_v18 = vld [vmem:[#allocation5 + $0x88] sm:$0xff]  ;;  %v583_v19 = vld [vmem:[#allocation5 + $0x180] sm:$0xff]  ;;  %v554_v36 = vld [vmem:[#allocation5 + $0x98] sm:$0xff] }
  0xc0   :  { %v112_v25 = vsel %vm98_vm5, %v109_v15, %v111_v20  ;;  %v1180_v28 = vmul.u32.u64.low %v113_v21, %v108_v24  ;;  %v1181_v29 = vmul.u32.u64.high %v113_v21, %v108_v24, %v1180_v28  ;;  %v120_v32 = vmul.u32 %v113_v21, %v104_v30  ;;  %v535_v22 = vld [vmem:[#allocation5] sm:$0xff]  ;;  %v536_v23 = vld [vmem:[#allocation5 + $0x8] sm:$0xff] }
  0xc1   :  { %v1177_v26 = vmul.u32.u64.low %v113_v21, %v112_v25  ;;  %v1178_v27 = vmul.u32.u64.high %v113_v21, %v112_v25, %v1177_v26  ;;  %v913_v20 = vpack.c.bf16 %v552_v18, %v551_v17  ;;  %v584_v21 = vld [vmem:[#allocation5 + $0x188] sm:$0xff]  ;;  %v567_v25 = vld [vmem:[#allocation5 + $0x100] sm:$0xff]  ;;  %v594_v18 = vld [vmem:[#allocation5 + $0x1d8] sm:$0xff] }
  0xc2   :  { %v123_v31 = vadd.s32 1, %v1181_v29  ;;  %v945_v24 = vpack.c.bf16 %v584_v21, %v583_v19  ;;  %v568_v26 = vld [vmem:[#allocation5 + $0x108] sm:$0xff]  ;;  %v545_v19 = vld [vmem:[#allocation5 + $0x50] sm:$0xff] }
  0xc3   :  { %vm122_vm6 = vc.u32 %v1178_v27, %v1180_v28  ;;  %v121_v47 = vadd.s32 %v1180_v28, %v1178_v27  ;;  %914 = vmatprep.subr.bf16.mxu0 %v913_v20  ;;  %v947_v27 = vpack.c.bf16 %v568_v26, %v567_v25  ;;  %v553_v28 = vld [vmem:[#allocation5 + $0x90] sm:$0xff]  ;;  %v546_v20 = vld [vmem:[#allocation5 + $0x58] sm:$0xff]  ;;  %v563_v25 = vld [vmem:[#allocation5 + $0xe0] sm:$0xff] }
  0xc4   :  { %v124_v33 = vsel %vm122_vm6, %v123_v31, %v1181_v29  ;;  %946 = vmatprep.subr.bf16.mxu1 %v945_v24  ;;  %v585_v29 = vld [vmem:[#allocation5 + $0x190] sm:$0xff]  ;;  %v917_v30 = vpack.c.bf16 %v554_v36, %v553_v28  ;;  %v586_v31 = vld [vmem:[#allocation5 + $0x198] sm:$0xff]  ;;  %v564_v26 = vld [vmem:[#allocation5 + $0xe8] sm:$0xff] }
  0xc5   :  { %v125_v34 = vadd.s32 %v124_v33, %v120_v32  ;;  %v537_v32 = vld [vmem:[#allocation5 + $0x10] sm:$0xff]  ;;  %v538_v33 = vld [vmem:[#allocation5 + $0x18] sm:$0xff]  ;;  %v937_v28 = vpack.c.bf16 %v564_v26, %v563_v25  ;;  %v596_v36 = vld [vmem:[#allocation5 + $0x1e8] sm:$0xff] }
  0xc6   :  { %v578_v24 = vld [vmem:[#allocation5 + $0x158] sm:$0xff]  ;;  %v778_v25 = vld [vmem:[%s1218_s4] ss:$0 sm:$0xff] }
  0xc7   :  { %v126_v37 = vadd.s32 536870912, %v125_v34 }
  0xc9   :  { %v127_v38 = vshrl.u32 %v126_v37, 30  ;;  %v919_v37 = vpack.c.bf16 %v538_v33, %v537_v32  ;;  %v579_v33 = vld [vmem:[#allocation5 + $0x160] sm:$0xff] }
  0xcb   :  { %v128_v39 = vshll.u32 %v127_v38, 30  ;;  %v151_v60 = vsub.s32 4, %v127_v38 }
  0xcd   :  { %v129_v40 = vsub.s32 %v125_v34, %v128_v39  ;;  %v152_v63 = vsel %vm67_vm8, %v151_v60, %v127_v38  ;;  %v949_v34 = vpack.c.bf16 %v586_v31, %v585_v29  ;;  %v569_v38 = vld [vmem:[#allocation5 + $0x110] sm:$0xff]  ;;  %v570_v39 = vld [vmem:[#allocation5 + $0x118] sm:$0xff]  ;;  %v547_v29 = vld [vmem:[#allocation5 + $0x60] sm:$0xff] }
  0xce   :  { %v154_v1 = vsel %vm66_vm9, 0, %v152_v63  ;;  %v541_v60 = vld [vmem:[#allocation5 + $0x30] sm:$0xff] }
  0xcf   :  { %v131_v41 = vsub.s32 0, %v129_v40  ;;  %v158_v2 = vadd.s32 3, %v154_v1  ;;  %v262_v4 = vand.u32 3, %v154_v1  ;;  %v574_v1 = vld [vmem:[#allocation5 + $0x138] sm:$0xff] }
  0xd1   :  { %v765_v42 = vmin.u32 %v131_v41, %v129_v40  ;;  %v159_v3 = vand.u32 3, %v158_v2  ;;  %vm267_vm11 = vcmp.eq.s32.totalorder %v262_v4, 2  ;;  %vm264_vm13 = vcmp.eq.s32.totalorder %v262_v4, 0  ;;  %v555_v41 = vld [vmem:[#allocation5 + $0xa0] sm:$0xff] }
  0xd2   :  { %vm263_vm15 = vcmp.lt.s32.totalorder %v262_v4, 2  ;;  %v560_v4 = vld [vmem:[#allocation5 + $0xc8] sm:$0xff] }
  0xd3   :  { %v133_v43 = vclz %v765_v42  ;;  %vm164_vm10 = vcmp.eq.s32.totalorder %v159_v3, 2  ;;  %vm161_vm12 = vcmp.eq.s32.totalorder %v159_v3, 0  ;;  %vm160_vm14 = vcmp.lt.s32.totalorder %v159_v3, 2  ;;  %v556_v42 = vld [vmem:[#allocation5 + $0xa8] sm:$0xff]  ;;  %v559_v3 = vld [vmem:[#allocation5 + $0xc0] sm:$0xff] }
  0xd5   :  { %v766_v45 = vadd.s32 4294967294, %v133_v43  ;;  %v587_v43 = vld [vmem:[#allocation5 + $0x1a0] sm:$0xff] }
  0xd7   :  { %vm767_vm7 = vcmp.lt.s32.totalorder %v766_v45, 0 }
  0xd8   :  { %v136_v46 = vsel %vm767_vm7, 0, %v766_v45  ;;  %v921_v45 = vpack.c.bf16 %v556_v42, %v555_v41  ;;  %v598_v42 = vld [vmem:[#allocation5 + $0x1f8] sm:$0xff] }
  0xd9   :  { %v137_v48 = vsub.s32 32, %v136_v46  ;;  %v141_v50 = vsub.s32 4294967266, %v136_v46  ;;  %v138_v51 = vshll.u32 %v129_v40, %v136_v46  ;;  %v951_v40 = vpack.c.bf16 %v570_v39, %v569_v38  ;;  %v588_v46 = vld [vmem:[#allocation5 + $0x1a8] sm:$0xff]  ;;  %v565_v38 = vld [vmem:[#allocation5 + $0xf0] sm:$0xff]  ;;  %v566_v39 = vld [vmem:[#allocation5 + $0xf8] sm:$0xff] }
  0xda   :  { %v941_v41 = vpack.c.bf16 %v566_v39, %v565_v38 }
  0xdb   :  { %v139_v52 = vshrl.u32 %v121_v47, %v137_v48  ;;  %v142_v53 = vadd.s32 127, %v141_v50  ;;  %v539_v47 = vld [vmem:[#allocation5 + $0x20] sm:$0xff]  ;;  %v540_v48 = vld [vmem:[#allocation5 + $0x28] sm:$0xff]  ;;  %v953_v50 = vpack.c.bf16 %v588_v46, %v587_v43  ;;  %v549_v43 = vld [vmem:[#allocation5 + $0x70] sm:$0xff] }
  0xdd   :  { %v140_v54 = vor.u32 %v139_v52, %v138_v51  ;;  %v143_v55 = vshll.u32 %v142_v53, 23  ;;  %v923_v51 = vpack.c.bf16 %v540_v48, %v539_v47  ;;  %v571_v52 = vld [vmem:[#allocation5 + $0x120] sm:$0xff]  ;;  %v572_v53 = vld [vmem:[#allocation5 + $0x128] sm:$0xff]  ;;  %v581_v48 = vld [vmem:[#allocation5 + $0x170] sm:$0xff] }
  0xdf   :  { %v144_v56 = vor.u32 4788187, %v143_v55  ;;  %v147_v58 = vcvt.s32.f32 %v140_v54  ;;  %v955_v54 = vpack.c.bf16 %v572_v53, %v571_v52  ;;  %v557_v55 = vld [vmem:[#allocation5 + $0xb0] sm:$0xff]  ;;  %v346_v52 = vshrl.u32 %v49_v35, 7 }
  0xe1   :  { %v145_v57 = vand.u32 2147483647, %v144_v56  ;;  %v558_v56 = vld [vmem:[#allocation5 + $0xb8] sm:$0xff]  ;;  %v347_v53 = vsub.s32 0, %v346_v52 }
  0xe3   :  { %v148_v59 = vmul.f32 %v147_v58, %v145_v57  ;;  %v589_v57 = vld [vmem:[#allocation5 + $0x1b0] sm:$0xff]  ;;  %v925_v58 = vpack.c.bf16 %v558_v56, %v557_v55  ;;  %v343_v55 = vld [vmem:[%s1216_s2] sm:$0xf]  ;;  %v351_v56 = vsub.s32 1, %v346_v52 }
  0xe5   :  { %v149_v61 = vxor.u32 2147483648, %v148_v59 }
  0xe7   :  { %v150_v62 = vsel %vm67_vm8, %v149_v61, %v148_v59  ;;  %v590_v59 = vld [vmem:[#allocation5 + $0x1b8] sm:$0xff] }
  0xe8   :  { %v153_v0 = vsel %vm66_vm9, %v1171_v44, %v150_v62  ;;  %v915_v44 = vpack.c.bf16 %v536_v23, %v535_v22  ;;  %v542_v61 = vld [vmem:[#allocation5 + $0x38] sm:$0xff]  ;;  %v957_v62 = vpack.c.bf16 %v590_v59, %v589_v57  ;;  %v935_v22 = vpack.c.bf16 %v546_v20, %v545_v19  ;;  %v577_v23 = vld [vmem:[#allocation5 + $0x150] sm:$0xff] }
  0xe9   :  { %999 = vcosq.f32 %v153_v0  ;;  %v927_v63 = vpack.c.bf16 %v542_v61, %v541_v60  ;;  %v359_v57 = vsub.s32 3, %v346_v52  ;;  %v352_v60 = vrot.slane %v343_v55, %v351_v56 }
  0xea   :  { %1001 = vsinq.f32 %v153_v0  ;;  %v573_v0 = vld [vmem:[#allocation5 + $0x130] sm:$0xff] }
  0xeb   :  { %v959_v2 = vpack.c.bf16 %v574_v1, %v573_v0  ;;  %v360_v61 = vrot.slane %v343_v55, %v359_v57 }
  0xf3   :  { %v1000_v5 = vpop.eup %999 }
  0xf4   :  { %v1002_v6 = vpop.eup %1001  ;;  %v165_v7 = vxor.u32 2147483648, %v1000_v5 }
  0xf5   :  { %v162_v8 = vxor.u32 2147483648, %v1002_v6 }
  0xf6   :  { %v166_v9 = vsel %vm164_vm10, %v165_v7, %v1002_v6  ;;  %v269_v49 = vsel %vm267_vm11, %v165_v7, %v1002_v6  ;;  %v929_v6 = vpack.c.bf16 %v560_v4, %v559_v3  ;;  %v592_v7 = vld [vmem:[#allocation5 + $0x1c8] sm:$0xff] }
  0xf7   :  { %v163_v10 = vsel %vm161_vm12, %v1000_v5, %v162_v8  ;;  %v266_v11 = vsel %vm264_vm13, %v1000_v5, %v162_v8  ;;  %v591_v5 = vld [vmem:[#allocation5 + $0x1c0] sm:$0xff] }
  0xf8   :  { %v167_v12 = vsel %vm160_vm14, %v163_v10, %v166_v9  ;;  %v270_v13 = vsel %vm263_vm15, %v266_v11, %v269_v49  ;;  %v543_v8 = vld [vmem:[#allocation5 + $0x40] sm:$0xff]  ;;  %v544_v9 = vld [vmem:[#allocation5 + $0x48] sm:$0xff]  ;;  %v961_v49 = vpack.c.bf16 %v592_v7, %v591_v5 }
  0xf9   :  { %v168_v14 = vsel %vm157_vm1, nan, %v167_v12  ;;  %v271_v15 = vsel %vm157_vm1, nan, %v270_v13  ;;  %v931_v10 = vpack.c.bf16 %v544_v9, %v543_v8  ;;  %v575_v11 = vld [vmem:[#allocation5 + $0x140] sm:$0xff]  ;;  %v576_v12 = vld [vmem:[#allocation5 + $0x148] sm:$0xff] }
  0xfa   :  { %v274_v16 = vsel %vm51_vm0, %v168_v14, %v271_v15  ;;  %v963_v13 = vpack.c.bf16 %v576_v12, %v575_v11  ;;  %v561_v14 = vld [vmem:[#allocation5 + $0xd0] sm:$0xff]  ;;  %v562_v15 = vld [vmem:[#allocation5 + $0xd8] sm:$0xff] }
  0xfb   :  { %772 = vmatmul.mubr.msk.f32.vlgmr.msra.gmra.mrb[0].mxu0 %vm275_vm2, %v274_v16  ;;  %773 = vmatmul.mubr.msk.f32.vlgmr.msra.gmra.mrb[0].mxu1 %vm275_vm2, %v274_v16  ;;  %v593_v16 = vld [vmem:[#allocation5 + $0x1d0] sm:$0xff]  ;;  %v933_v17 = vpack.c.bf16 %v562_v15, %v561_v14 }
  0xfc   :  { %916 = vmatpush3.bf16.msra.mxu0 %v915_v44  ;;  %948 = vmatpush3.bf16.msra.mxu1 %v947_v27  ;;  %v965_v21 = vpack.c.bf16 %v594_v18, %v593_v16  ;;  %v967_v44 = vpack.c.bf16 %v578_v24, %v577_v23  ;;  %v595_v27 = vld [vmem:[#allocation5 + $0x1e0] sm:$0xff] }
  0xfd   :  { %918 = vmatprep.subr.bf16.mxu0 %v917_v30  ;;  %950 = vmatprep.subr.bf16.mxu1 %v949_v34  ;;  %v548_v30 = vld [vmem:[#allocation5 + $0x68] sm:$0xff]  ;;  %v969_v31 = vpack.c.bf16 %v596_v36, %v595_v27 }
  0xfe   :  { %v939_v32 = vpack.c.bf16 %v548_v30, %v547_v29  ;;  %v580_v34 = vld [vmem:[#allocation5 + $0x168] sm:$0xff] }
 0x100   :  { %920 = vmatpush3.bf16.msra.mxu0 %v919_v37  ;;  %952 = vmatpush3.bf16.msra.mxu1 %v951_v40  ;;  %v971_v37 = vpack.c.bf16 %v580_v34, %v579_v33  ;;  %v597_v40 = vld [vmem:[#allocation5 + $0x1f0] sm:$0xff] }
 0x101   :  { %922 = vmatprep.subr.bf16.mxu0 %v921_v45  ;;  %954 = vmatprep.subr.bf16.mxu1 %v953_v50  ;;  %v550_v45 = vld [vmem:[#allocation5 + $0x78] sm:$0xff]  ;;  %v973_v46 = vpack.c.bf16 %v598_v42, %v597_v40 }
 0x102   :  { %v943_v47 = vpack.c.bf16 %v550_v45, %v549_v43  ;;  %v582_v50 = vld [vmem:[#allocation5 + $0x178] sm:$0xff] }
 0x104   :  { %924 = vmatpush3.bf16.msra.mxu0 %v923_v51  ;;  %956 = vmatpush3.bf16.msra.mxu1 %v955_v54  ;;  %v975_v51 = vpack.c.bf16 %v582_v50, %v581_v48  ;;  %v355_v54 = vsub.s32 2, %v346_v52 }
 0x105   :  { %926 = vmatprep.subr.bf16.mxu0 %v925_v58  ;;  %958 = vmatprep.subr.bf16.mxu1 %v957_v62  ;;  %v348_v58 = vrot.slane %v343_v55, %v347_v53 }
 0x106   :  { %v356_v59 = vrot.slane %v343_v55, %v355_v54 }
 0x108   :  { %928 = vmatpush3.bf16.msra.mxu0 %v927_v63  ;;  %960 = vmatpush3.bf16.msra.mxu1 %v959_v2 }
 0x109   :  { %930 = vmatprep.subr.bf16.mxu0 %v929_v6  ;;  %962 = vmatprep.subr.bf16.mxu1 %v961_v49 }
 0x10c   :  { %932 = vmatpush3.bf16.msra.mxu0 %v931_v10  ;;  %964 = vmatpush3.bf16.msra.mxu1 %v963_v13 }
 0x10d   :  { %934 = vmatprep.subr.bf16.mxu0 %v933_v17  ;;  %966 = vmatprep.subr.bf16.mxu1 %v965_v21 }
 0x110   :  { %936 = vmatpush3.bf16.msra.mxu0 %v935_v22  ;;  %968 = vmatpush3.bf16.msra.mxu1 %v967_v44 }
 0x111   :  { %938 = vmatprep.subr.bf16.mxu0 %v937_v28  ;;  %970 = vmatprep.subr.bf16.mxu1 %v969_v31 }
 0x114   :  { %940 = vmatpush3.bf16.msra.mxu0 %v939_v32  ;;  %972 = vmatpush3.bf16.msra.mxu1 %v971_v37 }
 0x115   :  { %942 = vmatprep.subr.bf16.mxu0 %v941_v41  ;;  %974 = vmatprep.subr.bf16.mxu1 %v973_v46 }
 0x118   :  { %944 = vmatpush3.bf16.msra.mxu0 %v943_v47  ;;  %976 = vmatpush3.bf16.msra.mxu1 %v975_v51 }
 0x1ce   :  { %v431_v62 = vpop.f32.mrb[0].mxu0  ;;  %v502_v63 = vpop.f32.mrb[0].mxu1 }
 0x1cf   :  { %v432_v0 = vadd.f32 %v431_v62, %v348_v58  ;;  %v503_v1 = vadd.f32 %v502_v63, %v356_v59  ;;  %v433_v2 = vpop.f32.mrb[1].mxu0  ;;  %v504_v3 = vpop.f32.mrb[1].mxu1 }
 0x1d0   :  { %v434_v4 = vadd.f32 %v433_v2, %v352_v60  ;;  %v505_v35 = vadd.f32 %v504_v3, %v360_v61 }
 0x1d1   :  { %v774_v5 = vmul.f32 -1.442695, %v432_v0  ;;  %v776_v6 = vmul.f32 -1.442695, %v503_v1 }
 0x1d2   :  { %v775_v7 = vmul.f32 -1.442695, %v434_v4  ;;  %v777_v8 = vmul.f32 -1.442695, %v505_v35 }
 0x1d3   :  { %1003 = vpow2.f32 %v774_v5 }
 0x1d4   :  { %1005 = vpow2.f32 %v776_v6 }
 0x1d5   :  { %1007 = vpow2.f32 %v775_v7 }
 0x1d6   :  { %1009 = vpow2.f32 %v777_v8 }
 0x1dd   :  { %v1004_v9 = vpop.eup %1003 }
 0x1de   :  { %v1006_v49 = vpop.eup %1005  ;;  %v519_v10 = vadd.f32 1.0, %v1004_v9 }
 0x1df   :  { %v1008_v11 = vpop.eup %1007  ;;  %v521_v12 = vadd.f32 1.0, %v1006_v49 }
 0x1e0   :  { %v1010_v13 = vpop.eup %1009  ;;  %1011 = vrcp.f32 %v519_v10  ;;  %v520_v14 = vadd.f32 1.0, %v1008_v11 }
 0x1e1   :  { %1013 = vrcp.f32 %v521_v12  ;;  %v522_v15 = vadd.f32 1.0, %v1010_v13 }
 0x1e2   :  { %1015 = vrcp.f32 %v520_v14 }
 0x1e3   :  { %1017 = vrcp.f32 %v522_v15 }
 0x1ea   :  { %v1012_v16 = vpop.eup %1011 }
 0x1eb   :  { %v1014_v17 = vpop.eup %1013  ;;  %v531_v21 = vmul.f32 %v1012_v16, %v432_v0 }
 0x1ec   :  { %v1016_v18 = vpop.eup %1015  ;;  %v533_v23 = vmul.f32 %v1014_v17, %v503_v1 }
 0x1ed   :  { %v1018_v19 = vpop.eup %1017  ;;  %v532_v20 = vmul.f32 %v1016_v18, %v434_v4 }
 0x1ee   :  { %v534_v22 = vmul.f32 %v1018_v19, %v505_v35 }
 0x1ef   :  { %670 = vmatprep.mubr.f32.mxu0 %v532_v20 }
 0x1f0   :  { %740 = vmatprep.mubr.f32.mxu1 %v534_v22  ;;  %671 = vmatmul.mubr.f32.vlgmr.msra.gmra.mrb[2].mxu0 %v531_v21 }
 0x1f1   :  { %741 = vmatmul.mubr.f32.vlgmr.msra.gmra.mrb[2].mxu1 %v533_v23 }
 0x2c3   :  { %v811_v24 = vpop.f32.mrb[2].mxu0 }
 0x2c4   :  { %v846_v44 = vpop.f32.mrb[2].mxu1  ;;  %v812_v26 = vpop.f32.mrb[3].mxu0 }
 0x2c5   :  { %v813_v27 = vadd.f32 %v812_v26, %v811_v24  ;;  %v847_v28 = vpop.f32.mrb[3].mxu1 }
 0x2c6   :  { %v848_v36 = vadd.f32 %v847_v28, %v846_v44 }
 0x2c7   :  { %v673_v29 = vadd.f32 %v813_v27, %v778_v25 }
 0x2c9   :  { %v743_v30 = vadd.f32 %v848_v36, %v673_v29 }
 0x2cb   :  { %746 = vst [vmem:[#allocation7] sm:$0xff] %v743_v30 }
 0x2cc   :  { %1074 = shalt.err (!%p1071_p6)
}
 0x2cd   :  { %s1075_s4 = scalar_lea.hbm %s1219_s5, 128 }
 0x2ce   :  { %p1076_p7 = scmp.ne.s32.totalorder %s1219_s5, %s1075_s4  ;;  %p1079_p8 = scmp.lt.u32.totalorder %s1075_s4, %s1219_s5 }
 0x2d0   :  { %p1081_p9 = pnand %p1079_p8, %p1076_p7 }
 0x2d2   :  { %1084 = shalt.err (!%p1081_p9)
}
 0x2d3   :  { %756 = dma.vmem_to_hbm [thread:$0]  %s754_s24, 128, %s1219_s5, [#allocation4]  }
 0x2d4   :  { %1089 = dma.done.wait [#allocation4], 128  }
 0x2d5   :  { %1090 = vsyncadd [#allocation4], 4294967168 }
 0x2d6   :  { %760 = vsyncpa [#allocation3], 1 }
 0x2d7   :  { %761 = vsyncpa [#allocation6], 1 }
 0x2d8   :  { %762 = vsyncpa [#allocation4], 1 }

</bundles_post_ra>
